<compile_context>
chip_gen: v6e
topology: v6e:2x2x1
jax: 0.10.0
libtpu: 0.0.40
codegen_flags: <defaults>
</compile_context>

<pallas_src>
import jax
import jax.numpy as jnp
from jax.experimental import pallas as pl
from jax.experimental.pallas import tpu as pltpu


# ----------------------------------------------------------------------------
# Kernels
# ----------------------------------------------------------------------------
def _mlp_kernel_resident(x_ref, w1_ref, b1_ref, w2_ref, b2_ref, o_ref):
    # fc1 on the MXU, f32 accumulate; x is cast in-kernel (VPU, hidden under MXU).
    xc = x_ref[...].astype(w1_ref.dtype)
    h = jnp.dot(xc, w1_ref[...], preferred_element_type=jnp.float32)
    h = jnp.maximum(h + b1_ref[...], 0.0)                 # bias + ReLU in f32
    y = jnp.dot(h.astype(w2_ref.dtype), w2_ref[...],
                preferred_element_type=jnp.float32)
    o_ref[...] = (y + b2_ref[...]).astype(o_ref.dtype)


def _mlp_kernel_hsplit(x_ref, w1_ref, b1_ref, w2_ref, b2_ref, o_ref, acc_ref):
    # Hidden dim tiled on the trailing "arbitrary" grid axis; f32 accumulator.
    h_idx = pl.program_id(1)

    @pl.when(h_idx == 0)
    def _():
        acc_ref[...] = jnp.zeros_like(acc_ref)

    xc = x_ref[...].astype(w1_ref.dtype)
    h = jnp.dot(xc, w1_ref[...], preferred_element_type=jnp.float32)
    h = jnp.maximum(h + b1_ref[...], 0.0)
    acc_ref[...] += jnp.dot(h.astype(w2_ref.dtype), w2_ref[...],
                            preferred_element_type=jnp.float32)

    @pl.when(h_idx == pl.num_programs(1) - 1)
    def _():
        o_ref[...] = (acc_ref[...] + b2_ref[...]).astype(o_ref.dtype)


# ----------------------------------------------------------------------------
# Wrapper
# ----------------------------------------------------------------------------
def _round_up(x, m):
    return ((x + m - 1) // m) * m


def _cdiv(a, b):
    return (a + b - 1) // b


def prepare_params(w1, b1, w2, b2, *, compute_dtype=jnp.bfloat16):
    """One-time weight prep (hoisted out of the per-call path).

    Casts the weights to the matmul dtype and zero-pads the hidden dim to a
    lane multiple (128). Input/output feature dims stay unpadded (full-extent
    blocks are legal and avoid extra HBM passes on activations).
    """
    D_in, H = w1.shape
    D_out = w2.shape[1]
    h_p = _round_up(H, 128)

    w1p = w1.astype(compute_dtype)
    w2p = w2.astype(compute_dtype)
    b1p = jnp.reshape(b1, (1, H)).astype(jnp.float32)
    b2p = jnp.reshape(b2, (1, D_out)).astype(jnp.float32)
    if h_p != H:
        w1p = jnp.zeros((D_in, h_p), compute_dtype).at[:, :H].set(w1p)
        w2p = jnp.zeros((h_p, D_out), compute_dtype).at[:H, :].set(w2p)
        b1p = jnp.zeros((1, h_p), jnp.float32).at[:, :H].set(b1p)
    return w1p, b1p, w2p, b2p


def simple_feed_forward(x, w1p, b1p, w2p, b2p, *, block_m=None, out_dtype=None,
                        force_h_split=False):
    """Fused MLP forward: relu(x @ W1 + b1) @ W2 + b2.

    x: (B, D_in) any float dtype. w1p/b1p/w2p/b2p: outputs of prepare_params().
    Returns (B, D_out) in out_dtype (default: x.dtype).
    """
    B, D_in = x.shape
    h_p = w1p.shape[1]
    D_out = w2p.shape[1]
    out_dtype = x.dtype if out_dtype is None else out_dtype

    xsz = jnp.dtype(x.dtype).itemsize
    csz = jnp.dtype(w1p.dtype).itemsize
    osz = jnp.dtype(out_dtype).itemsize

    # ---- generation-aware VMEM budget ---------------------------------------
    try:
        vmem_cap = int(pltpu.get_tpu_info().vmem_capacity_bytes)
    except Exception:
        vmem_cap = 64 << 20                  # conservative (v7x-sized) fallback
    vmem_ceiling = int(0.85 * vmem_cap)      # ~56 MiB on v7x, ~109 MiB v5e/v6e
    headroom = 2 << 20

    # ---- balanced batch tiling; >= 2 grid steps when B allows (v7x 2 TCs) ----
    if block_m is None:
        block_m = 512 if vmem_cap >= (100 << 20) else 256
    if B <= 8:
        tm = B                               # single (possibly sub-8) full block
    else:
        tm = _round_up(_cdiv(B, _cdiv(B, block_m)), 8)
        if _cdiv(B, tm) < 2:                 # let both v7x TensorCores run
            tm = _round_up(_cdiv(B, 2), 8)

    def act_bytes(tm_, h_blk):
        # double-buffered x / out tiles + f32 h + its cast copy + f32 accumulator
        return (2 * tm_ * D_in * xsz + 2 * tm_ * D_out * osz
                + tm_ * h_blk * (4 + csz) + tm_ * D_out * 4)

    # Single-buffered resident weights (+ f32 biases).
    w_resident = (D_in * h_p + h_p * D_out) * csz + (h_p + D_out) * 4
    resident_fits = (w_resident + act_bytes(tm, h_p) + headroom) <= vmem_ceiling

    if resident_fits and not force_h_split:
        grid = (_cdiv(B, tm),)
        est = w_resident + act_bytes(tm, h_p) + headroom
        vmem_limit = int(min(max(est, 32 << 20), vmem_ceiling))
        return pl.pallas_call(
            _mlp_kernel_resident,
            out_shape=jax.ShapeDtypeStruct((B, D_out), out_dtype),
            grid_spec=pltpu.PrefetchScalarGridSpec(
                num_scalar_prefetch=0,
                grid=grid,
                in_specs=[
                    # x: tiled over batch (double-buffered by default).
                    pl.BlockSpec((tm, D_in), lambda i: (i, 0)),
                    # Grid-invariant weights/biases: single-buffered residents.
                    pl.BlockSpec((D_in, h_p), lambda i: (0, 0),
                                 pipeline_mode=pl.Buffered(1)),
                    pl.BlockSpec((1, h_p), lambda i: (0, 0),
                                 pipeline_mode=pl.Buffered(1)),
                    pl.BlockSpec((h_p, D_out), lambda i: (0, 0),
                                 pipeline_mode=pl.Buffered(1)),
                    pl.BlockSpec((1, D_out), lambda i: (0, 0),
                                 pipeline_mode=pl.Buffered(1)),
                ],
                out_specs=pl.BlockSpec((tm, D_out), lambda i: (i, 0)),
            ),
            compiler_params=pltpu.CompilerParams(
                dimension_semantics=("parallel",),
                vmem_limit_bytes=vmem_limit,
            ),
        )(x, w1p, b1p, w2p, b2p)

    # ---- H-split fallback: tile the hidden dim, accumulate in f32 VMEM ------
    h_tile = None
    while h_tile is None:
        for cand in (4096, 2048, 1024, 512, 256, 128):
            if h_p % cand:
                continue
            wt = 2 * ((D_in * cand + cand * D_out) * csz + cand * 4) + D_out * 4
            if wt + act_bytes(tm, cand) + headroom <= vmem_ceiling:
                h_tile = cand
                break
        if h_tile is None:
            if tm <= 8:
                h_tile = 128                 # smallest legal tile; let Mosaic try
            else:
                tm = max(8, _round_up(tm // 2, 8))

    grid = (_cdiv(B, tm), h_p // h_tile)
    est = (2 * ((D_in * h_tile + h_tile * D_out) * csz + h_tile * 4)
           + D_out * 4 + act_bytes(tm, h_tile) + headroom)
    vmem_limit = int(min(max(est, 32 << 20), vmem_ceiling))

    return pl.pallas_call(
        _mlp_kernel_hsplit,
        out_shape=jax.ShapeDtypeStruct((B, D_out), out_dtype),
        grid_spec=pltpu.PrefetchScalarGridSpec(
            num_scalar_prefetch=0,
            grid=grid,
            in_specs=[
                # x: constant across the h axis -> Pallas skips the re-fetch.
                pl.BlockSpec((tm, D_in), lambda i, h: (i, 0)),
                # W1 columns / b1 / W2 rows tiled over the hidden dim
                # (double-buffered by default so their DMA overlaps the MXU).
                pl.BlockSpec((D_in, h_tile), lambda i, h: (0, h)),
                pl.BlockSpec((1, h_tile), lambda i, h: (0, h)),
                pl.BlockSpec((h_tile, D_out), lambda i, h: (h, 0)),
                # b2 is grid-invariant -> single-buffered.
                pl.BlockSpec((1, D_out), lambda i, h: (0, 0),
                             pipeline_mode=pl.Buffered(1)),
            ],
            out_specs=pl.BlockSpec((tm, D_out), lambda i, h: (i, 0)),
            scratch_shapes=[pltpu.VMEM((tm, D_out), jnp.float32)],
        ),
        compiler_params=pltpu.CompilerParams(
            dimension_semantics=("parallel", "arbitrary"),
            vmem_limit_bytes=vmem_limit,
        ),
    )(x, w1p, b1p, w2p, b2p)


# ----------------------------------------------------------------------------
# Params (nn.Linear-style uniform init, deterministic)
# ----------------------------------------------------------------------------
def make_params(key, input_dim, hidden_dim, output_dim, dtype=jnp.float32):
    k1, k2, k3, k4 = jax.random.split(key, 4)
    lim1 = 1.0 / (input_dim ** 0.5)
    lim2 = 1.0 / (hidden_dim ** 0.5)
    w1 = jax.random.uniform(k1, (input_dim, hidden_dim), dtype, -lim1, lim1)
    b1 = jax.random.uniform(k2, (1, hidden_dim), dtype, -lim1, lim1)
    w2 = jax.random.uniform(k3, (hidden_dim, output_dim), dtype, -lim2, lim2)
    b2 = jax.random.uniform(k4, (1, output_dim), dtype, -lim2, lim2)
    return w1, b1, w2, b2


if __name__ == "__main__":
    key = jax.random.PRNGKey(0)
    kx1, kp1, kx2, kp2 = jax.random.split(key, 4)

    # --- small shape: resident-weight path (bf16 matmuls, f32 accumulate) ----
    batch, input_dim, hidden_dim, output_dim = 8, 32, 64, 16
    x = jax.random.normal(kx1, (batch, input_dim), jnp.float32)
    w1, b1, w2, b2 = make_params(kp1, input_dim, hidden_dim, output_dim)
    params = prepare_params(w1, b1, w2, b2)            # hoisted weight prep
    out = jax.block_until_ready(simple_feed_forward(x, *params))
    ref = jnp.maximum(x @ w1 + b1, 0.0) @ w2 + b2
    assert out.shape == (batch, output_dim)
    assert jnp.allclose(out, ref, atol=5e-2, rtol=5e-2), (
        float(jnp.max(jnp.abs(out - ref))))

    # --- exercise the H-split fallback + uneven batch tiles (f32 weights) ----
    batch2, in2, hid2, out2_dim = 24, 128, 384, 64
    x2 = jax.random.normal(kx2, (batch2, in2), jnp.float32)
    w1b, b1b, w2b, b2b = make_params(kp2, in2, hid2, out2_dim)
    params2 = prepare_params(w1b, b1b, w2b, b2b, compute_dtype=jnp.float32)
    out2 = jax.block_until_ready(
        simple_feed_forward(x2, *params2, force_h_split=True))
    ref2 = jnp.maximum(x2 @ w1b + b1b, 0.0) @ w2b + b2b
    assert out2.shape == (batch2, out2_dim)
    assert jnp.allclose(out2, ref2, atol=2e-2, rtol=2e-2), (
        float(jnp.max(jnp.abs(out2 - ref2))))

    print("KERNEL_OK")
</pallas_src>

<mosaic_0001>
module attributes {stable_mosaic.version = 11 : i64} {
  func.func @_mlp_kernel_resident(%arg0: i32, %arg1: memref<8x32xf32, #tpu.memory_space<vmem>>, %arg2: memref<32x128xbf16, #tpu.memory_space<vmem>>, %arg3: memref<1x128xf32, #tpu.memory_space<vmem>>, %arg4: memref<128x16xbf16, #tpu.memory_space<vmem>>, %arg5: memref<1x16xf32, #tpu.memory_space<vmem>>, %arg6: memref<8x16xf32, #tpu.memory_space<vmem>>) attributes {dimension_semantics = [#tpu.dimension_semantics<parallel>], iteration_bounds = array<i64: 1>, scalar_prefetch = 0 : i64, scratch_operands = 0 : i64, tpu.core_type = #tpu.core_type<tc>, window_params = [{transform_indices = @transform_0, window_bounds = array<i64: 8, 32>}, {pipeline_mode = #tpu.pipeline_mode<synchronous>, transform_indices = @transform_1, window_bounds = array<i64: 32, 128>}, {pipeline_mode = #tpu.pipeline_mode<synchronous>, transform_indices = @transform_2, window_bounds = array<i64: 1, 128>}, {pipeline_mode = #tpu.pipeline_mode<synchronous>, transform_indices = @transform_3, window_bounds = array<i64: 128, 16>}, {pipeline_mode = #tpu.pipeline_mode<synchronous>, transform_indices = @transform_4, window_bounds = array<i64: 1, 16>}, {transform_indices = @transform_5, window_bounds = array<i64: 8, 16>}]} {
    %c0 = arith.constant 0 : index
    %c0_0 = arith.constant 0 : index
    %0 = vector.load %arg1[%c0, %c0_0] : memref<8x32xf32, #tpu.memory_space<vmem>>, vector<8x32xf32>
    %1 = arith.truncf %0 : vector<8x32xf32> to vector<8x32xbf16>
    %c0_1 = arith.constant 0 : index
    %c0_2 = arith.constant 0 : index
    %2 = vector.load %arg2[%c0_1, %c0_2] : memref<32x128xbf16, #tpu.memory_space<vmem>>, vector<32x128xbf16>
    %cst = arith.constant dense<0.000000e+00> : vector<8x128xf32>
    %3 = tpu.matmul %1, %2, %cst {dimension_numbers = #tpu.dot_dimension_numbers<[1], [0], [0], [1], [0, 0, 1, 1], [], []>} : vector<8x32xbf16>, vector<32x128xbf16>, vector<8x128xf32> -> vector<8x128xf32>
    %c0_3 = arith.constant 0 : index
    %c0_4 = arith.constant 0 : index
    %4 = vector.load %arg3[%c0_3, %c0_4] : memref<1x128xf32, #tpu.memory_space<vmem>>, vector<1x128xf32>
    %5 = vector.broadcast %4 : vector<1x128xf32> to vector<8x128xf32>
    %6 = arith.addf %3, %5 : vector<8x128xf32>
    %cst_5 = arith.constant 0.000000e+00 : f32
    %7 = vector.broadcast %cst_5 : f32 to vector<8x128xf32>
    %8 = arith.maximumf %6, %7 : vector<8x128xf32>
    %9 = arith.truncf %8 : vector<8x128xf32> to vector<8x128xbf16>
    %c0_6 = arith.constant 0 : index
    %c0_7 = arith.constant 0 : index
    %10 = vector.load %arg4[%c0_6, %c0_7] : memref<128x16xbf16, #tpu.memory_space<vmem>>, vector<128x16xbf16>
    %cst_8 = arith.constant dense<0.000000e+00> : vector<8x16xf32>
    %11 = tpu.matmul %9, %10, %cst_8 {dimension_numbers = #tpu.dot_dimension_numbers<[1], [0], [0], [1], [0, 0, 1, 1], [], []>} : vector<8x128xbf16>, vector<128x16xbf16>, vector<8x16xf32> -> vector<8x16xf32>
    %c0_9 = arith.constant 0 : index
    %c0_10 = arith.constant 0 : index
    %12 = vector.load %arg5[%c0_9, %c0_10] : memref<1x16xf32, #tpu.memory_space<vmem>>, vector<1x16xf32>
    %13 = vector.broadcast %12 : vector<1x16xf32> to vector<8x16xf32>
    %14 = arith.addf %11, %13 : vector<8x16xf32>
    %c0_11 = arith.constant 0 : index
    %c0_12 = arith.constant 0 : index
    %15 = vector.load %arg6[%c0_11, %c0_12] : memref<8x16xf32, #tpu.memory_space<vmem>>, vector<8x16xf32>
    tpu.vector_store %arg6[%c0_11, %c0_12], %14 {strides = array<i32>} : memref<8x16xf32, #tpu.memory_space<vmem>>, vector<8x16xf32>,
    return
  }
  func.func @transform_0(%arg0: i32) -> (i32, i32) {
    %c0_i32 = arith.constant 0 : i32
    %c0_i32_0 = arith.constant 0 : i32
    return %arg0, %c0_i32 : i32, i32
  }
  func.func @transform_1(%arg0: i32) -> (i32, i32) {
    %c0_i32 = arith.constant 0 : i32
    %c0_i32_0 = arith.constant 0 : i32
    %c0_i32_1 = arith.constant 0 : i32
    return %c0_i32, %c0_i32_0 : i32, i32
  }
  func.func @transform_2(%arg0: i32) -> (i32, i32) {
    %c0_i32 = arith.constant 0 : i32
    %c0_i32_0 = arith.constant 0 : i32
    %c0_i32_1 = arith.constant 0 : i32
    return %c0_i32, %c0_i32_0 : i32, i32
  }
  func.func @transform_3(%arg0: i32) -> (i32, i32) {
    %c0_i32 = arith.constant 0 : i32
    %c0_i32_0 = arith.constant 0 : i32
    %c0_i32_1 = arith.constant 0 : i32
    return %c0_i32, %c0_i32_0 : i32, i32
  }
  func.func @transform_4(%arg0: i32) -> (i32, i32) {
    %c0_i32 = arith.constant 0 : i32
    %c0_i32_0 = arith.constant 0 : i32
    %c0_i32_1 = arith.constant 0 : i32
    return %c0_i32, %c0_i32_0 : i32, i32
  }
  func.func @transform_5(%arg0: i32) -> (i32, i32) {
    %c0_i32 = arith.constant 0 : i32
    %c0_i32_0 = arith.constant 0 : i32
    return %arg0, %c0_i32 : i32, i32
  }
}

</mosaic_0001>

<bundles_post_ra>
// kernel: tpu_custom_call.1
= control target key start
LH: loop header
LB: loop body
LE: loop exit
PB: predicated region body
PF: predicated region fallthrough
CT: control target
= control target key end

     0   :  { %v308_v1 = vmov 0.0   ;;  %vm309_vm0 = vmmov 0   ;;  %vm47_vm1 = vcmask 261120   ;;  %s383_s0 = inlined_call_operand.vmem [shape: f32[8,32], index: 0, kind: input, shape index: {}]   ;;  %s384_s1 = inlined_call_operand.vmem [shape: bf16[32,128], index: 1, kind: input, shape index: {}]   ;;  %s385_s2 = inlined_call_operand.vmem [shape: f32[1,128], index: 2, kind: input, shape index: {}]   ;;  %s386_s3 = inlined_call_operand.vmem [shape: bf16[128,16], index: 3, kind: input, shape index: {}]   ;;  %s387_s4 = inlined_call_operand.vmem [shape: f32[1,16], index: 4, kind: input, shape index: {}]   ;;  %s388_s5 = inlined_call_operand.hbm [shape: f32[8,16], index: 5, kind: output, shape index: {}]  }
   0x1   :  { %v276_v0 = vld [vmem:[%s384_s1 + $0x8] sm:$0xff]   ;;  %245 = vmatprep.subr.bf16.mxu0 %v308_v1  ;;  %v277_v2 = vld [vmem:[%s384_s1] sm:$0xff]   ;;  %253 = vmatprep.subr.bf16.mxu1 %v308_v1  ;;  %v278_v4 = vld [vmem:[%s386_s3 + $0x38] sm:$0xff]  }
   0x2   :  { %246 = vmatpush3.bf16.msra.mxu0 %v276_v0  ;;  %249 = vmatprep.mubr.msk.bf16.mxu0 %vm309_vm0, %v308_v1  ;;  %v22_v3 = vld [vmem:[%s383_s0] sm:$0xff]  ;;  %v279_v6 = vld [vmem:[%s386_s3 + $0x30] sm:$0xff]   ;;  %v280_v7 = vld [vmem:[%s386_s3 + $0x28] sm:$0xff]  }
   0x3   :  { %247 = vmatprep.subr.bf16.mxu0 %v308_v1  ;;  %269 = vmatprep.mubr.msk.bf16.mxu1 %vm309_vm0, %v308_v1  ;;  %v23_v5 = vpack.c.bf16 %v22_v3, %v22_v3 }
   0x4   :  { %254 = vmatpush3.bf16.msra.mxu1 %v278_v4 }
   0x5   :  { %255 = vmatprep.subr.bf16.mxu1 %v308_v1 }
   0x6   :  { %248 = vmatpush3.bf16.msra.mxu0 %v277_v2 }
   0x8   :  { %256 = vmatpush3.bf16.msra.mxu1 %v279_v6 }
   0x9   :  { %250 = vmatmul.mubr.msk.bf16.vlgmr.msra.gmra.mxu0 %vm47_vm1, %v23_v5  ;;  %257 = vmatprep.subr.bf16.mxu1 %v308_v1 }
   0xa   :  { %10 = vsyncpa [#allocation3], 0  ;;  %v281_v8 = vld [vmem:[%s386_s3 + $0x20] sm:$0xff]   ;;  %v282_v9 = vld [vmem:[%s386_s3 + $0x18] sm:$0xff]   ;;  %s310_s17 = smov [#allocation2]   ;;  %vm204_vm2 = vcmask 130048  }
   0xb   :  { %v283_v10 = vld [vmem:[%s386_s3 + $0x10] sm:$0xff]   ;;  %v284_v11 = vld [vmem:[%s386_s3 + $0x8] sm:$0xff]   ;;  %v285_v12 = vld [vmem:[%s386_s3] sm:$0xff]   ;;  %s212_s18 = sshll.u32 %s310_s17, 4  ;;  %s213_s18 = int_to_ptr.vmem [resolvable:$true] %s212_s18 }
   0xc   :  { %258 = vmatpush3.bf16.msra.mxu1 %v280_v7  ;;  %v220_v13 = vld [vmem:[%s385_s2] ss:$0 sm:$0xff]  ;;  %s286_s2 = scalar_lea.vmem %s213_s18, 128  ;;  %p291_p1 = scmp.lt.s32.totalorder %s213_s18, %s213_s18 }
   0xd   :  { %259 = vmatprep.subr.bf16.mxu1 %v308_v1  ;;  %v224_v21 = vld [vmem:[%s387_s4] ss:$0 sm:$0xff]  ;;  %p287_p0 = scmp.ne.s32.totalorder %s213_s18, %s286_s2  ;;  %p292_p2 = scmp.lt.s32.totalorder %s286_s2, %s286_s2 }
   0xf   :  { %p293_p3 = por %p292_p2, %p291_p1 }
  0x10   :  { %260 = vmatpush3.bf16.msra.mxu1 %v281_v8 }
  0x11   :  { %261 = vmatprep.subr.bf16.mxu1 %v308_v1  ;;  %p294_p4 = pnand %p293_p3, %p287_p0 }
  0x14   :  { %262 = vmatpush3.bf16.msra.mxu1 %v282_v9 }
  0x15   :  { %263 = vmatprep.subr.bf16.mxu1 %v308_v1 }
  0x18   :  { %264 = vmatpush3.bf16.msra.mxu1 %v283_v10 }
  0x19   :  { %265 = vmatprep.subr.bf16.mxu1 %v308_v1 }
  0x1c   :  { %266 = vmatpush3.bf16.msra.mxu1 %v284_v11 }
  0x1d   :  { %267 = vmatprep.subr.bf16.mxu1 %v308_v1 }
  0x20   :  { %268 = vmatpush3.bf16.msra.mxu1 %v285_v12 }
  0xc9   :  { %v85_v14 = vpop.f32.mrf.mxu0 }
  0xca   :  { %v86_v15 = vadd.f32 %v220_v13, %v85_v14 }
  0xcb   :  { %v251_v16 = vpop.f32.mrf.mxu0 }
  0xcc   :  { %v91_v17 = vmax.f32 %v86_v15, 0.0 }
  0xcd   :  { %v88_v18 = vpop.f32.mrf.mxu0 }
  0xce   :  { %v92_v19 = vpack.c.bf16 %v91_v17, %v91_v17 }
  0xcf   :  { %v252_v20 = vpop.f32.mrf.mxu0 }
  0xd0   :  { %270 = vmatmul.mubr.bf16.vlgmr.msra.gmra.mxu1 %v92_v19 }
 0x190   :  { %v198_v22 = vpop.f32.mrf.mxu1 }
 0x191   :  { %v199_v23 = vadd.f32 %v224_v21, %v198_v22 }
 0x192   :  { %v271_v24 = vpop.f32.mrf.mxu1 }
 0x193   :  { %205 = vst.msk [vmem:[#allocation2] sm:$0xff] %vm204_vm2, %v199_v23 }
 0x194   :  { %v201_v25 = vpop.f32.mrf.mxu1 }
 0x195   :  { %297 = shalt.err (!%p294_p4)
}
 0x196   :  { %215 = dma.vmem_to_hbm [thread:$0]  %s213_s18, 128, %s388_s5, [#allocation3]   ;;  %v272_v26 = vpop.f32.mrf.mxu1 }
 0x197   :  { %306 = dma.done.wait [#allocation3], 128  }
 0x198   :  { %307 = vsyncadd [#allocation3], 4294967168 }
 0x199   :  { %219 = vsyncpa [#allocation3], 1 }

</bundles_post_ra>
